<compile_context>
chip_gen: v7x
topology: tpu7x:2x2x1
jax: 0.10.0
libtpu: 0.0.40
codegen_flags: <defaults>
</compile_context>

<pallas_src>
import math

import jax
import jax.numpy as jnp
from jax.experimental import pallas as pl
from jax.experimental.pallas import tpu as pltpu


def _ffn_kernel(x_ref, w1_ref, b1_ref, w2_ref, b2_ref, o_ref):
    # x_ref: (block_rows, d_model)
    # w1_ref: (d_model, d_ff), b1_ref: (1, d_ff)
    # w2_ref: (d_ff, d_model), b2_ref: (1, d_model)
    x = x_ref[...].astype(jnp.float32)

    # h1 = x @ W1 + b1   (MXU, f32 accumulation)
    h = jnp.dot(x, w1_ref[...].astype(jnp.float32),
                preferred_element_type=jnp.float32)
    h = h + b1_ref[...].astype(jnp.float32)

    # dropout(h1): identity at inference (see TODO at top of file)

    # out = h @ W2 + b2
    out = jnp.dot(h, w2_ref[...].astype(jnp.float32),
                  preferred_element_type=jnp.float32)
    out = out + b2_ref[...].astype(jnp.float32)

    o_ref[...] = out.astype(o_ref.dtype)


def _round_up(n, m):
    return ((n + m - 1) // m) * m


def _pick_block_rows(rows, d_model, d_ff, io_bytes,
                     budget_bytes=40 << 20, max_rows=1024):
    """Largest multiple-of-8 row tile that keeps the VMEM working set under
    `budget_bytes` (conservative enough for v7x's 64 MiB physical VMEM)."""
    # Resident weights + biases (single copy; constant-index blocks).
    weight_bytes = (2 * d_model * d_ff + d_ff + d_model) * io_bytes
    # Per-row cost: double-buffered in/out tiles + f32 intermediates (x, h, out).
    per_row = (2 * 2 * d_model * io_bytes) + 4 * (2 * d_model + d_ff)
    avail = max(budget_bytes - 2 * weight_bytes, 1 << 20)
    br = min(max_rows, avail // per_row, _round_up(rows, 8))
    br = max(8, (int(br) // 8) * 8)
    return br


def _vmem_limit_bytes(block_rows, d_model, d_ff, io_bytes):
    io = 2 * 2 * block_rows * d_model * io_bytes           # double-buffered x / out tiles
    weights = (2 * d_model * d_ff + d_ff + d_model) * io_bytes
    interm = 4 * block_rows * (2 * d_model + d_ff)         # f32 x, h, out inside body
    est = int(1.5 * (io + 2 * weights + interm))
    return max(32 << 20, min(est, 96 << 20))


def positionwise_ffn_pallas(x, w1, b1, w2, b2, *, block_rows=None):
    """x: (..., d_model); w1: (d_model, d_ff); b1: (d_ff,);
       w2: (d_ff, d_model); b2: (d_model,).  Weights are stored pre-transposed
       relative to torch.nn.Linear (i.e. w1 == W1.T, w2 == W2.T)."""
    orig_shape = x.shape
    d_model = orig_shape[-1]
    d_ff = w1.shape[1]
    rows = math.prod(orig_shape[:-1]) if len(orig_shape) > 1 else 1

    x2 = x.reshape(rows, d_model)
    b1_2 = b1.reshape(1, d_ff)
    b2_2 = b2.reshape(1, d_model)

    io_bytes = jnp.dtype(x.dtype).itemsize
    if block_rows is None:
        block_rows = _pick_block_rows(rows, d_model, d_ff, io_bytes)
    block_rows = max(8, min(block_rows, _round_up(rows, 8)))

    grid = (pl.cdiv(rows, block_rows),)

    out = pl.pallas_call(
        _ffn_kernel,
        out_shape=jax.ShapeDtypeStruct((rows, d_model), x.dtype),
        grid_spec=pltpu.PrefetchScalarGridSpec(
            num_scalar_prefetch=0,
            grid=grid,
            in_specs=[
                pl.BlockSpec((block_rows, d_model), lambda i: (i, 0)),
                pl.BlockSpec((d_model, d_ff), lambda i: (0, 0)),  # resident
                pl.BlockSpec((1, d_ff), lambda i: (0, 0)),        # resident
                pl.BlockSpec((d_ff, d_model), lambda i: (0, 0)),  # resident
                pl.BlockSpec((1, d_model), lambda i: (0, 0)),     # resident
            ],
            out_specs=pl.BlockSpec((block_rows, d_model), lambda i: (i, 0)),
        ),
        compiler_params=pltpu.CompilerParams(
            dimension_semantics=("parallel",),
            vmem_limit_bytes=_vmem_limit_bytes(block_rows, d_model, d_ff, io_bytes),
        ),
    )(x2, w1, b1_2, w2, b2_2)

    return out.reshape(orig_shape)


def positionwise_ffn_ref(x, w1, b1, w2, b2):
    x32 = x.astype(jnp.float32)
    h = jnp.dot(x32, w1.astype(jnp.float32)) + b1.astype(jnp.float32)
    out = jnp.dot(h, w2.astype(jnp.float32)) + b2.astype(jnp.float32)
    return out.astype(x.dtype)


if __name__ == "__main__":
    key = jax.random.PRNGKey(0)
    batch, seq, d_model, d_ff = 2, 8, 32, 128

    kx, kw1, kb1, kw2, kb2 = jax.random.split(key, 5)
    x = jax.random.normal(kx, (batch, seq, d_model), dtype=jnp.float32)

    # Parameters (stored as (in, out), i.e. already transposed vs torch.nn.Linear).
    w1 = 0.05 * jax.random.normal(kw1, (d_model, d_ff), dtype=jnp.float32)
    b1 = 0.01 * jax.random.normal(kb1, (d_ff,), dtype=jnp.float32)
    w2 = 0.05 * jax.random.normal(kw2, (d_ff, d_model), dtype=jnp.float32)
    b2 = 0.01 * jax.random.normal(kb2, (d_model,), dtype=jnp.float32)

    out = positionwise_ffn_pallas(x, w1, b1, w2, b2)
    out = jax.block_until_ready(out)

    ref = positionwise_ffn_ref(x, w1, b1, w2, b2)
    assert out.shape == x.shape and out.dtype == x.dtype
    assert jnp.allclose(out, ref, atol=1e-5, rtol=1e-5), "mismatch vs reference"

    print("KERNEL_OK")
</pallas_src>

<mosaic_0001>
module attributes {stable_mosaic.version = 11 : i64} {
  func.func @_ffn_kernel(%arg0: i32, %arg1: memref<16x32xf32, #tpu.memory_space<vmem>>, %arg2: memref<32x128xf32, #tpu.memory_space<vmem>>, %arg3: memref<1x128xf32, #tpu.memory_space<vmem>>, %arg4: memref<128x32xf32, #tpu.memory_space<vmem>>, %arg5: memref<1x32xf32, #tpu.memory_space<vmem>>, %arg6: memref<16x32xf32, #tpu.memory_space<vmem>>) attributes {dimension_semantics = [#tpu.dimension_semantics<parallel>], iteration_bounds = array<i64: 1>, scalar_prefetch = 0 : i64, scratch_operands = 0 : i64, tpu.core_type = #tpu.core_type<tc>, window_params = [{transform_indices = @transform_0, window_bounds = array<i64: 16, 32>}, {pipeline_mode = #tpu.pipeline_mode<synchronous>, transform_indices = @transform_1, window_bounds = array<i64: 32, 128>}, {pipeline_mode = #tpu.pipeline_mode<synchronous>, transform_indices = @transform_2, window_bounds = array<i64: 1, 128>}, {pipeline_mode = #tpu.pipeline_mode<synchronous>, transform_indices = @transform_3, window_bounds = array<i64: 128, 32>}, {pipeline_mode = #tpu.pipeline_mode<synchronous>, transform_indices = @transform_4, window_bounds = array<i64: 1, 32>}, {transform_indices = @transform_5, window_bounds = array<i64: 16, 32>}]} {
    %c0 = arith.constant 0 : index
    %c0_0 = arith.constant 0 : index
    %0 = vector.load %arg1[%c0, %c0_0] : memref<16x32xf32, #tpu.memory_space<vmem>>, vector<16x32xf32>
    %c0_1 = arith.constant 0 : index
    %c0_2 = arith.constant 0 : index
    %1 = vector.load %arg2[%c0_1, %c0_2] : memref<32x128xf32, #tpu.memory_space<vmem>>, vector<32x128xf32>
    %cst = arith.constant dense<0.000000e+00> : vector<16x128xf32>
    %2 = tpu.matmul %0, %1, %cst {dimension_numbers = #tpu.dot_dimension_numbers<[1], [0], [0], [1], [0, 0, 1, 1], [], []>} : vector<16x32xf32>, vector<32x128xf32>, vector<16x128xf32> -> vector<16x128xf32>
    %c0_3 = arith.constant 0 : index
    %c0_4 = arith.constant 0 : index
    %3 = vector.load %arg3[%c0_3, %c0_4] : memref<1x128xf32, #tpu.memory_space<vmem>>, vector<1x128xf32>
    %4 = vector.broadcast %3 : vector<1x128xf32> to vector<16x128xf32>
    %5 = arith.addf %2, %4 : vector<16x128xf32>
    %c0_5 = arith.constant 0 : index
    %c0_6 = arith.constant 0 : index
    %6 = vector.load %arg4[%c0_5, %c0_6] : memref<128x32xf32, #tpu.memory_space<vmem>>, vector<128x32xf32>
    %cst_7 = arith.constant dense<0.000000e+00> : vector<16x32xf32>
    %7 = tpu.matmul %5, %6, %cst_7 {dimension_numbers = #tpu.dot_dimension_numbers<[1], [0], [0], [1], [0, 0, 1, 1], [], []>} : vector<16x128xf32>, vector<128x32xf32>, vector<16x32xf32> -> vector<16x32xf32>
    %c0_8 = arith.constant 0 : index
    %c0_9 = arith.constant 0 : index
    %8 = vector.load %arg5[%c0_8, %c0_9] : memref<1x32xf32, #tpu.memory_space<vmem>>, vector<1x32xf32>
    %9 = vector.broadcast %8 : vector<1x32xf32> to vector<16x32xf32>
    %10 = arith.addf %7, %9 : vector<16x32xf32>
    %c0_10 = arith.constant 0 : index
    %c0_11 = arith.constant 0 : index
    %11 = vector.load %arg6[%c0_10, %c0_11] : memref<16x32xf32, #tpu.memory_space<vmem>>, vector<16x32xf32>
    tpu.vector_store %arg6[%c0_10, %c0_11], %10 {strides = array<i32>} : memref<16x32xf32, #tpu.memory_space<vmem>>, vector<16x32xf32>,
    return
  }
  func.func @transform_0(%arg0: i32) -> (i32, i32) {
    %c0_i32 = arith.constant 0 : i32
    %c0_i32_0 = arith.constant 0 : i32
    return %arg0, %c0_i32 : i32, i32
  }
  func.func @transform_1(%arg0: i32) -> (i32, i32) {
    %c0_i32 = arith.constant 0 : i32
    %c0_i32_0 = arith.constant 0 : i32
    %c0_i32_1 = arith.constant 0 : i32
    return %c0_i32, %c0_i32_0 : i32, i32
  }
  func.func @transform_2(%arg0: i32) -> (i32, i32) {
    %c0_i32 = arith.constant 0 : i32
    %c0_i32_0 = arith.constant 0 : i32
    %c0_i32_1 = arith.constant 0 : i32
    return %c0_i32, %c0_i32_0 : i32, i32
  }
  func.func @transform_3(%arg0: i32) -> (i32, i32) {
    %c0_i32 = arith.constant 0 : i32
    %c0_i32_0 = arith.constant 0 : i32
    %c0_i32_1 = arith.constant 0 : i32
    return %c0_i32, %c0_i32_0 : i32, i32
  }
  func.func @transform_4(%arg0: i32) -> (i32, i32) {
    %c0_i32 = arith.constant 0 : i32
    %c0_i32_0 = arith.constant 0 : i32
    %c0_i32_1 = arith.constant 0 : i32
    return %c0_i32, %c0_i32_0 : i32, i32
  }
  func.func @transform_5(%arg0: i32) -> (i32, i32) {
    %c0_i32 = arith.constant 0 : i32
    %c0_i32_0 = arith.constant 0 : i32
    return %arg0, %c0_i32 : i32, i32
  }
}

</mosaic_0001>

<bundles_post_ra>
// kernel: tpu_custom_call.1
= control target key start
LH: loop header
LB: loop body
LE: loop exit
PB: predicated region body
PF: predicated region fallthrough
CT: control target
= control target key end

     0   :  { %vm34_vm0 = vcmask 261120   ;;  %s494_s0 = inlined_call_operand.vmem [shape: f32[16,32], index: 0, kind: input, shape index: {}]   ;;  %s495_s1 = inlined_call_operand.vmem [shape: f32[32,128], index: 1, kind: input, shape index: {}]   ;;  %s496_s2 = inlined_call_operand.vmem [shape: f32[1,128], index: 2, kind: input, shape index: {}]   ;;  %s497_s3 = inlined_call_operand.vmem [shape: f32[128,32], index: 3, kind: input, shape index: {}]   ;;  %s498_s4 = inlined_call_operand.vmem [shape: f32[1,32], index: 4, kind: input, shape index: {}]   ;;  %s499_s5 = inlined_call_operand.hbm [shape: f32[16,32], index: 5, kind: output, shape index: {}]  }
   0x1   :  { %v23_v0 = vld [vmem:[%s495_s1] sm:$0xff]  ;;  %v24_v1 = vld [vmem:[%s495_s1 + $0x8] sm:$0xff]  ;;  %v25_v2 = vld [vmem:[%s495_s1 + $0x10] sm:$0xff] }
   0x2   :  { %v306_v3 = vpack.c.bf16 %v24_v1, %v23_v0  ;;  %v26_v4 = vld [vmem:[%s495_s1 + $0x18] sm:$0xff]  ;;  %v21_v5 = vld [vmem:[%s494_s0] sm:$0xff]  ;;  %v117_v8 = vld [vmem:[%s497_s3 + $0x8] sm:$0xff] }
   0x3   :  { %v310_v6 = vpack.c.bf16 %v26_v4, %v25_v2  ;;  %268 = vmatprep.mubr.msk.f32.mxu0 %vm34_vm0, %v21_v5  ;;  %v116_v7 = vld [vmem:[%s497_s3] sm:$0xff]  ;;  %v118_v9 = vld [vmem:[%s497_s3 + $0x10] sm:$0xff]  ;;  %v119_v11 = vld [vmem:[%s497_s3 + $0x18] sm:$0xff] }
   0x4   :  { %307 = vmatprep.subr.bf16.mxu0 %v306_v3  ;;  %v314_v10 = vpack.c.bf16 %v117_v8, %v116_v7  ;;  %v318_v12 = vpack.c.bf16 %v119_v11, %v118_v9  ;;  %v120_v13 = vld [vmem:[%s497_s3 + $0x20] sm:$0xff]  ;;  %v121_v14 = vld [vmem:[%s497_s3 + $0x28] sm:$0xff] }
   0x5   :  { %309 = vmatpush3.bf16.msra.mxu0 %v306_v3 }
   0x6   :  { %311 = vmatprep.subr.bf16.mxu0 %v310_v6  ;;  %315 = vmatprep.subr.bf16.mxu1 %v314_v10 }
   0x7   :  { %317 = vmatpush3.bf16.msra.mxu1 %v314_v10 }
   0x8   :  { %10 = vsyncpa [#allocation3], 0  ;;  %319 = vmatprep.subr.bf16.mxu1 %v318_v12  ;;  %v322_v15 = vpack.c.bf16 %v121_v14, %v120_v13  ;;  %v22_v16 = vld [vmem:[%s494_s0 + $0x8] sm:$0xff]  ;;  %v122_v17 = vld [vmem:[%s497_s3 + $0x30] sm:$0xff]  ;;  %s373_s13 = smov [#allocation2]  }
   0x9   :  { %313 = vmatpush3.bf16.msra.mxu0 %v310_v6  ;;  %v123_v18 = vld [vmem:[%s497_s3 + $0x38] sm:$0xff]  ;;  %v124_v20 = vld [vmem:[%s497_s3 + $0x40] sm:$0xff]  ;;  %v125_v21 = vld [vmem:[%s497_s3 + $0x48] sm:$0xff]  ;;  %s221_s14 = sshll.u32 %s373_s13, 4  ;;  %s222_s14 = int_to_ptr.vmem [resolvable:$true] %s221_s14 }
   0xa   :  { %v326_v19 = vpack.c.bf16 %v123_v18, %v122_v17  ;;  %v330_v22 = vpack.c.bf16 %v125_v21, %v124_v20  ;;  %v126_v23 = vld [vmem:[%s497_s3 + $0x50] sm:$0xff]  ;;  %v127_v24 = vld [vmem:[%s497_s3 + $0x58] sm:$0xff]  ;;  %v128_v26 = vld [vmem:[%s497_s3 + $0x60] sm:$0xff]  ;;  %p354_p1 = scmp.lt.s32.totalorder %s222_s14, %s222_s14 }
   0xb   :  { %321 = vmatpush3.bf16.msra.mxu1 %v318_v12  ;;  %v334_v25 = vpack.c.bf16 %v127_v24, %v126_v23  ;;  %v129_v27 = vld [vmem:[%s497_s3 + $0x68] sm:$0xff]  ;;  %v130_v29 = vld [vmem:[%s497_s3 + $0x70] sm:$0xff]  ;;  %v131_v30 = vld [vmem:[%s497_s3 + $0x78] sm:$0xff] }
   0xc   :  { %269 = vmatmul.mubr.msk.f32.vlgmr.msra.gmra.mrb[0].mxu0 %vm34_vm0, %v22_v16  ;;  %323 = vmatprep.subr.bf16.mxu1 %v322_v15  ;;  %v338_v28 = vpack.c.bf16 %v129_v27, %v128_v26  ;;  %v342_v31 = vpack.c.bf16 %v131_v30, %v130_v29  ;;  %v232_v32 = vld [vmem:[%s496_s2] ss:$0 sm:$0xff]  ;;  %s349_s2 = scalar_lea.vmem %s222_s14, 256 }
   0xd   :  { %v235_v37 = vld [vmem:[%s498_s4] ss:$0 sm:$0xff]  ;;  %p350_p0 = scmp.ne.s32.totalorder %s222_s14, %s349_s2  ;;  %p355_p2 = scmp.lt.s32.totalorder %s349_s2, %s349_s2 }
   0xf   :  { %325 = vmatpush3.bf16.msra.mxu1 %v322_v15  ;;  %p356_p3 = por %p355_p2, %p354_p1 }
  0x10   :  { %327 = vmatprep.subr.bf16.mxu1 %v326_v19 }
  0x11   :  { %p357_p4 = pnand %p356_p3, %p350_p0 }
  0x13   :  { %329 = vmatpush3.bf16.msra.mxu1 %v326_v19 }
  0x14   :  { %331 = vmatprep.subr.bf16.mxu1 %v330_v22 }
  0x17   :  { %333 = vmatpush3.bf16.msra.mxu1 %v330_v22 }
  0x18   :  { %335 = vmatprep.subr.bf16.mxu1 %v334_v25 }
  0x1b   :  { %337 = vmatpush3.bf16.msra.mxu1 %v334_v25 }
  0x1c   :  { %339 = vmatprep.subr.bf16.mxu1 %v338_v28 }
  0x1f   :  { %341 = vmatpush3.bf16.msra.mxu1 %v338_v28 }
  0x20   :  { %343 = vmatprep.subr.bf16.mxu1 %v342_v31 }
  0x23   :  { %345 = vmatpush3.bf16.msra.mxu1 %v342_v31 }
  0xdf   :  { %v270_v33 = vpop.f32.mrb[0].mxu0 }
  0xe0   :  { %v107_v34 = vpop.f32.mrb[1].mxu0  ;;  %v113_v36 = vadd.f32 %v270_v33, %v232_v32 }
  0xe1   :  { %v108_v35 = vadd.f32 %v232_v32, %v107_v34 }
  0xe3   :  { %303 = vmatprep.mubr.f32.mxu1 %v108_v35 }
  0xe4   :  { %304 = vmatmul.mubr.f32.vlgmr.msra.gmra.mrb[0].mxu1 %v113_v36 }
 0x1b7   :  { %v305_v38 = vpop.f32.mrb[0].mxu1 }
 0x1b8   :  { %v211_v39 = vadd.f32 %v305_v38, %v235_v37  ;;  %v205_v40 = vpop.f32.mrb[1].mxu1 }
 0x1b9   :  { %v206_v41 = vadd.f32 %v235_v37, %v205_v40 }
 0x1ba   :  { %215 = vst.msk [vmem:[#allocation2 + $0x8] sm:$0xff] %vm34_vm0, %v211_v39 }
 0x1bb   :  { %214 = vst.msk [vmem:[#allocation2] sm:$0xff] %vm34_vm0, %v206_v41 }
 0x1bc   :  { %360 = shalt.err (!%p357_p4)
}
 0x1bd   :  { %s361_s15 = scalar_lea.hbm %s499_s5, 256 }
 0x1be   :  { %p362_p5 = scmp.ne.s32.totalorder %s499_s5, %s361_s15  ;;  %p365_p6 = scmp.lt.u32.totalorder %s361_s15, %s499_s5 }
 0x1c0   :  { %p367_p7 = pnand %p365_p6, %p362_p5 }
 0x1c2   :  { %370 = shalt.err (!%p367_p7)
}
 0x1c3   :  { %s374_s20 = smov 128   ;;  %s375_s21 = smov 8  }
 0x1c4   :  { %227 = dma.vmem_to_hbm [thread:$0]  %s222_s14, 256, %s499_s5, [#allocation3], %s374_s20, %s374_s20, %s375_s21  }
 0x1c5   :  { %371 = dma.done.wait [#allocation3], 256  }
 0x1c6   :  { %372 = vsyncadd [#allocation3], 4294967040 }
 0x1c7   :  { %231 = vsyncpa [#allocation3], 1 }

</bundles_post_ra>
